<compile_context>
chip_gen: v7x
topology: tpu7x:2x2x1
jax: 0.10.0
libtpu: 0.0.40
codegen_flags: <defaults>
</compile_context>

<pallas_src>
import functools

import jax
import jax.numpy as jnp
from jax import lax
from jax.experimental import pallas as pl
from jax.experimental.pallas import tpu as pltpu


def residual_stack_kernel(x_ref, w1_ref, b1_ref, w2_ref, b2_ref, masks_ref,
                          o_ref, xs_ref, *, H, W, n_res_layers, use_bf16):
    """All residual layers + final ReLU for one batch element.

    x_ref    : (C, S)    input, S = H*W (NCHW with space flattened)
    w1_ref   : (R, 9*C)  3x3 conv weights, column (ky*3+kx)*C + c
    b1_ref   : (R, 1)
    w2_ref   : (C, R)    1x1 conv weights (output-channel major)
    b2_ref   : (C, 1)
    masks_ref: (9, S)    f32 {0,1} zero-padding masks, one row per tap
    o_ref    : (C, S)
    xs_ref   : (C, S)    f32 VMEM scratch holding the residual state
    """
    S = H * W
    mm_dtype = jnp.bfloat16 if use_bf16 else jnp.float32

    # Residual state stays resident in VMEM across all layers.
    xs_ref[...] = x_ref[...].astype(jnp.float32)

    w1 = w1_ref[...].astype(mm_dtype)        # (R, 9C)
    w2 = w2_ref[...].astype(mm_dtype)        # (C, R)
    b1 = b1_ref[...]                         # (R, 1)
    b2 = b2_ref[...]                         # (C, 1)
    masks = masks_ref[...]                   # (9, S)

    for _ in range(n_res_layers):            # same weights every layer (shared)
        xr = jnp.maximum(xs_ref[...], 0.0)   # ReLU before the 3x3 conv

        # Build the (9C, S) im2col operand with lane rolls + boundary masks
        # (zero padding commutes with the leading ReLU since relu(0) == 0).
        taps = []
        k = 0
        for oy in (-1, 0, 1):
            for ox in (-1, 0, 1):
                d = oy * W + ox
                if d == 0:
                    sh = xr                                   # center tap
                else:
                    sh = pltpu.roll(xr, (-d) % S, 1)          # shifted input
                    sh = sh * masks[k:k + 1, :]               # kill wrap-around
                taps.append(sh.astype(mm_dtype))
                k += 1
        patches = jnp.concatenate(taps, axis=0)               # (9C, S)

        # 3x3 conv as ONE deep matmul, then bias + ReLU.
        acc = jnp.dot(w1, patches, preferred_element_type=jnp.float32)  # (R,S)
        h = jnp.maximum(acc + b1, 0.0).astype(mm_dtype)
        # 1x1 conv + bias, residual add (state stays f32 in VMEM).
        out = jnp.dot(w2, h, preferred_element_type=jnp.float32) + b2   # (C,S)
        xs_ref[...] = xs_ref[...] + out

    o_ref[...] = jnp.maximum(xs_ref[...], 0.0).astype(o_ref.dtype)


def residual_stack_forward(x_nchw, params, *, n_res_layers=2, use_bf16=True):
    """Full ResidualStack forward. x_nchw: (N, C, H, W), like PyTorch."""
    w1r, b1, w2t, b2 = params
    N, C, H, W = x_nchw.shape
    S = H * W
    R = w1r.shape[0]

    x_flat = x_nchw.reshape(N, C, S)          # free reshape, stays NCHW

    # Static boundary masks for the 9 taps (oy-major, ox-minor order).
    yy = jnp.arange(H).reshape(H, 1)
    xx = jnp.arange(W).reshape(1, W)
    mask_rows = []
    for oy in (-1, 0, 1):
        for ox in (-1, 0, 1):
            m = ((yy + oy >= 0) & (yy + oy < H) &
                 (xx + ox >= 0) & (xx + ox < W))              # (H, W)
            mask_rows.append(m.reshape(S))
    masks = jnp.stack(mask_rows, axis=0).astype(jnp.float32)  # (9, S)

    kernel = functools.partial(residual_stack_kernel, H=H, W=W,
                               n_res_layers=n_res_layers, use_bf16=use_bf16)

    flops = 2 * n_res_layers * N * S * (9 * C * R + R * C)
    bytes_accessed = 4 * (2 * N * C * S + w1r.size + w2t.size
                          + b1.size + b2.size + masks.size)

    out_flat = pl.pallas_call(
        kernel,
        out_shape=jax.ShapeDtypeStruct((N, C, S), x_nchw.dtype),
        grid=(N,),
        in_specs=[
            pl.BlockSpec((None, C, S), lambda n: (n, 0, 0)),
            pl.BlockSpec((R, 9 * C), lambda n: (0, 0)),
            pl.BlockSpec((R, 1), lambda n: (0, 0)),
            pl.BlockSpec((C, R), lambda n: (0, 0)),
            pl.BlockSpec((C, 1), lambda n: (0, 0)),
            pl.BlockSpec((9, S), lambda n: (0, 0)),
        ],
        out_specs=pl.BlockSpec((None, C, S), lambda n: (n, 0, 0)),
        scratch_shapes=[pltpu.VMEM((C, S), jnp.float32)],
        compiler_params=pltpu.CompilerParams(
            dimension_semantics=("parallel",)),
        cost_estimate=pl.CostEstimate(flops=flops, transcendentals=0,
                                      bytes_accessed=bytes_accessed),
    )(x_flat, w1r, b1, w2t, b2, masks)

    return out_flat.reshape(N, C, H, W)


def init_params(key, input_channels, res_output_channels):
    """PyTorch-style uniform init; returns kernel-layout and conv-layout params."""
    C, R = input_channels, res_output_channels
    k1, k2, k3, k4 = jax.random.split(key, 4)
    bound1 = 1.0 / (C * 9) ** 0.5
    w1_hwio = jax.random.uniform(k1, (3, 3, C, R), jnp.float32, -bound1, bound1)
    b1 = jax.random.uniform(k2, (R,), jnp.float32, -bound1, bound1)
    bound2 = 1.0 / R ** 0.5
    w2_hwio = jax.random.uniform(k3, (1, 1, R, C), jnp.float32, -bound2, bound2)
    b2 = jax.random.uniform(k4, (C,), jnp.float32, -bound2, bound2)

    # Kernel layouts: w1r[r, (ky*3+kx)*C + c] = w1_hwio[ky, kx, c, r];
    # w2t[co, ci] = w2_hwio[0, 0, ci, co].
    w1r = jnp.transpose(w1_hwio, (3, 0, 1, 2)).reshape(R, 9 * C)   # (R, 9C)
    w2t = jnp.transpose(w2_hwio[0, 0], (1, 0))                     # (C, R)
    kernel_params = (w1r, b1.reshape(R, 1), w2t, b2.reshape(C, 1))
    conv_params = (w1_hwio, b1, w2_hwio, b2)
    return kernel_params, conv_params


def reference_forward(x_nchw, conv_params, n_res_layers=2):
    """Pure-JAX reference matching the PyTorch module (NCHW throughout)."""
    w1_hwio, b1, w2_hwio, b2 = conv_params
    dn = ('NCHW', 'HWIO', 'NCHW')
    x = x_nchw
    for _ in range(n_res_layers):                 # same (shared) layer n times
        h = jnp.maximum(x, 0.0)
        h = lax.conv_general_dilated(h, w1_hwio, (1, 1), 'SAME',
                                     dimension_numbers=dn)
        h = h + b1.reshape(1, -1, 1, 1)
        h = jnp.maximum(h, 0.0)
        h = lax.conv_general_dilated(h, w2_hwio, (1, 1), 'VALID',
                                     dimension_numbers=dn)
        h = h + b2.reshape(1, -1, 1, 1)
        x = x + h
    return jnp.maximum(x, 0.0)


if __name__ == "__main__":
    # Scaled-down config (module defaults are C=128, R=32, n_res_layers=2).
    # H*W = 256 keeps the lane axis a multiple of 128 (dense stores).
    N, C, H, W = 2, 16, 16, 16
    R = 8
    n_res_layers = 2

    key = jax.random.PRNGKey(0)
    kx, kp = jax.random.split(key)
    x = jax.random.normal(kx, (N, C, H, W), jnp.float32)   # NCHW like PyTorch

    kernel_params, conv_params = init_params(kp, C, R)

    out = residual_stack_forward(x, kernel_params,
                                 n_res_layers=n_res_layers, use_bf16=True)
    out = jax.block_until_ready(out)

    ref = reference_forward(x, conv_params, n_res_layers=n_res_layers)
    assert out.shape == (N, C, H, W)
    # bf16 MXU operands (f32 accumulation) -> loosened tolerance vs f32 ref.
    max_err = float(jnp.max(jnp.abs(out - ref)))
    assert jnp.allclose(out, ref, atol=3e-2, rtol=3e-2), (
        f"mismatch vs reference: max abs err = {max_err}")

    print("KERNEL_OK")
</pallas_src>

<mosaic_0001>
module attributes {stable_mosaic.version = 11 : i64} {
  func.func @residual_stack_kernel(%arg0: i32, %arg1: memref<1x16x256xf32, #tpu.memory_space<vmem>>, %arg2: memref<8x144xf32, #tpu.memory_space<vmem>>, %arg3: memref<8x1xf32, #tpu.memory_space<vmem>>, %arg4: memref<16x8xf32, #tpu.memory_space<vmem>>, %arg5: memref<16x1xf32, #tpu.memory_space<vmem>>, %arg6: memref<9x256xf32, #tpu.memory_space<vmem>>, %arg7: memref<1x16x256xf32, #tpu.memory_space<vmem>>, %arg8: memref<16x256xf32, #tpu.memory_space<vmem>>) attributes {dimension_semantics = [#tpu.dimension_semantics<parallel>], iteration_bounds = array<i64: 2>, scalar_prefetch = 0 : i64, scratch_operands = 1 : i64, tpu.core_type = #tpu.core_type<tc>, window_params = [{transform_indices = @transform_0, window_bounds = array<i64: 1, 16, 256>}, {pipeline_mode = #tpu.pipeline_mode<synchronous>, transform_indices = @transform_1, window_bounds = array<i64: 8, 144>}, {pipeline_mode = #tpu.pipeline_mode<synchronous>, transform_indices = @transform_2, window_bounds = array<i64: 8, 1>}, {pipeline_mode = #tpu.pipeline_mode<synchronous>, transform_indices = @transform_3, window_bounds = array<i64: 16, 8>}, {pipeline_mode = #tpu.pipeline_mode<synchronous>, transform_indices = @transform_4, window_bounds = array<i64: 16, 1>}, {pipeline_mode = #tpu.pipeline_mode<synchronous>, transform_indices = @transform_5, window_bounds = array<i64: 9, 256>}, {transform_indices = @transform_6, window_bounds = array<i64: 1, 16, 256>}]} {
    %c0 = arith.constant 0 : index
    %c0_0 = arith.constant 0 : index
    %c0_1 = arith.constant 0 : index
    %0 = vector.load %arg1[%c0, %c0_0, %c0_1] : memref<1x16x256xf32, #tpu.memory_space<vmem>>, vector<1x16x256xf32>
    %1 = vector.shape_cast %0 : vector<1x16x256xf32> to vector<16x256xf32>
    %c0_2 = arith.constant 0 : index
    %c0_3 = arith.constant 0 : index
    %2 = vector.load %arg8[%c0_2, %c0_3] : memref<16x256xf32, #tpu.memory_space<vmem>>, vector<16x256xf32>
    tpu.vector_store %arg8[%c0_2, %c0_3], %1 {strides = array<i32>} : memref<16x256xf32, #tpu.memory_space<vmem>>, vector<16x256xf32>,
    %c0_4 = arith.constant 0 : index
    %c0_5 = arith.constant 0 : index
    %3 = vector.load %arg2[%c0_4, %c0_5] : memref<8x144xf32, #tpu.memory_space<vmem>>, vector<8x144xf32>
    %4 = arith.truncf %3 : vector<8x144xf32> to vector<8x144xbf16>
    %c0_6 = arith.constant 0 : index
    %c0_7 = arith.constant 0 : index
    %5 = vector.load %arg4[%c0_6, %c0_7] : memref<16x8xf32, #tpu.memory_space<vmem>>, vector<16x8xf32>
    %6 = arith.truncf %5 : vector<16x8xf32> to vector<16x8xbf16>
    %c0_8 = arith.constant 0 : index
    %c0_9 = arith.constant 0 : index
    %7 = vector.load %arg3[%c0_8, %c0_9] : memref<8x1xf32, #tpu.memory_space<vmem>>, vector<8x1xf32>
    %c0_10 = arith.constant 0 : index
    %c0_11 = arith.constant 0 : index
    %8 = vector.load %arg5[%c0_10, %c0_11] : memref<16x1xf32, #tpu.memory_space<vmem>>, vector<16x1xf32>
    %c0_12 = arith.constant 0 : index
    %c0_13 = arith.constant 0 : index
    %9 = vector.load %arg6[%c0_12, %c0_13] : memref<9x256xf32, #tpu.memory_space<vmem>>, vector<9x256xf32>
    %c0_14 = arith.constant 0 : index
    %c0_15 = arith.constant 0 : index
    %10 = vector.load %arg8[%c0_14, %c0_15] : memref<16x256xf32, #tpu.memory_space<vmem>>, vector<16x256xf32>
    %cst = arith.constant 0.000000e+00 : f32
    %11 = vector.broadcast %cst : f32 to vector<16x256xf32>
    %12 = arith.maximumf %10, %11 : vector<16x256xf32>
    %c17_i32 = arith.constant 17 : i32
    %13 = tpu.dynamic_rotate %12 by %c17_i32 dim 1 : vector<16x256xf32>, i32 -> vector<16x256xf32>
    %14 = vector.extract_strided_slice %9 {offsets = [0, 0], sizes = [1, 256], strides = [1, 1]} : vector<9x256xf32> to vector<1x256xf32>
    %15 = vector.broadcast %14 : vector<1x256xf32> to vector<16x256xf32>
    %16 = arith.mulf %13, %15 : vector<16x256xf32>
    %17 = arith.truncf %16 : vector<16x256xf32> to vector<16x256xbf16>
    %c16_i32 = arith.constant 16 : i32
    %18 = tpu.dynamic_rotate %12 by %c16_i32 dim 1 : vector<16x256xf32>, i32 -> vector<16x256xf32>
    %19 = vector.extract_strided_slice %9 {offsets = [1, 0], sizes = [1, 256], strides = [1, 1]} : vector<9x256xf32> to vector<1x256xf32>
    %20 = vector.broadcast %19 : vector<1x256xf32> to vector<16x256xf32>
    %21 = arith.mulf %18, %20 : vector<16x256xf32>
    %22 = arith.truncf %21 : vector<16x256xf32> to vector<16x256xbf16>
    %c15_i32 = arith.constant 15 : i32
    %23 = tpu.dynamic_rotate %12 by %c15_i32 dim 1 : vector<16x256xf32>, i32 -> vector<16x256xf32>
    %24 = vector.extract_strided_slice %9 {offsets = [2, 0], sizes = [1, 256], strides = [1, 1]} : vector<9x256xf32> to vector<1x256xf32>
    %25 = vector.broadcast %24 : vector<1x256xf32> to vector<16x256xf32>
    %26 = arith.mulf %23, %25 : vector<16x256xf32>
    %27 = arith.truncf %26 : vector<16x256xf32> to vector<16x256xbf16>
    %c1_i32 = arith.constant 1 : i32
    %28 = tpu.dynamic_rotate %12 by %c1_i32 dim 1 : vector<16x256xf32>, i32 -> vector<16x256xf32>
    %29 = vector.extract_strided_slice %9 {offsets = [3, 0], sizes = [1, 256], strides = [1, 1]} : vector<9x256xf32> to vector<1x256xf32>
    %30 = vector.broadcast %29 : vector<1x256xf32> to vector<16x256xf32>
    %31 = arith.mulf %28, %30 : vector<16x256xf32>
    %32 = arith.truncf %31 : vector<16x256xf32> to vector<16x256xbf16>
    %33 = arith.truncf %12 : vector<16x256xf32> to vector<16x256xbf16>
    %c255_i32 = arith.constant 255 : i32
    %34 = tpu.dynamic_rotate %12 by %c255_i32 dim 1 : vector<16x256xf32>, i32 -> vector<16x256xf32>
    %35 = vector.extract_strided_slice %9 {offsets = [5, 0], sizes = [1, 256], strides = [1, 1]} : vector<9x256xf32> to vector<1x256xf32>
    %36 = vector.broadcast %35 : vector<1x256xf32> to vector<16x256xf32>
    %37 = arith.mulf %34, %36 : vector<16x256xf32>
    %38 = arith.truncf %37 : vector<16x256xf32> to vector<16x256xbf16>
    %c241_i32 = arith.constant 241 : i32
    %39 = tpu.dynamic_rotate %12 by %c241_i32 dim 1 : vector<16x256xf32>, i32 -> vector<16x256xf32>
    %40 = vector.extract_strided_slice %9 {offsets = [6, 0], sizes = [1, 256], strides = [1, 1]} : vector<9x256xf32> to vector<1x256xf32>
    %41 = vector.broadcast %40 : vector<1x256xf32> to vector<16x256xf32>
    %42 = arith.mulf %39, %41 : vector<16x256xf32>
    %43 = arith.truncf %42 : vector<16x256xf32> to vector<16x256xbf16>
    %c240_i32 = arith.constant 240 : i32
    %44 = tpu.dynamic_rotate %12 by %c240_i32 dim 1 : vector<16x256xf32>, i32 -> vector<16x256xf32>
    %45 = vector.extract_strided_slice %9 {offsets = [7, 0], sizes = [1, 256], strides = [1, 1]} : vector<9x256xf32> to vector<1x256xf32>
    %46 = vector.broadcast %45 : vector<1x256xf32> to vector<16x256xf32>
    %47 = arith.mulf %44, %46 : vector<16x256xf32>
    %48 = arith.truncf %47 : vector<16x256xf32> to vector<16x256xbf16>
    %c239_i32 = arith.constant 239 : i32
    %49 = tpu.dynamic_rotate %12 by %c239_i32 dim 1 : vector<16x256xf32>, i32 -> vector<16x256xf32>
    %50 = vector.extract_strided_slice %9 {offsets = [8, 0], sizes = [1, 256], strides = [1, 1]} : vector<9x256xf32> to vector<1x256xf32>
    %51 = vector.broadcast %50 : vector<1x256xf32> to vector<16x256xf32>
    %52 = arith.mulf %49, %51 : vector<16x256xf32>
    %53 = arith.truncf %52 : vector<16x256xf32> to vector<16x256xbf16>
    %54 = tpu.concatenate %17, %22, %27, %32, %33, %38, %43, %48, %53 in 0 : vector<16x256xbf16>, vector<16x256xbf16>, vector<16x256xbf16>, vector<16x256xbf16>, vector<16x256xbf16>, vector<16x256xbf16>, vector<16x256xbf16>, vector<16x256xbf16>, vector<16x256xbf16> -> vector<144x256xbf16>
    %cst_16 = arith.constant dense<0.000000e+00> : vector<8x256xf32>
    %55 = tpu.matmul %4, %54, %cst_16 {dimension_numbers = #tpu.dot_dimension_numbers<[1], [0], [0], [1], [0, 0, 1, 1], [], []>} : vector<8x144xbf16>, vector<144x256xbf16>, vector<8x256xf32> -> vector<8x256xf32>
    %56 = vector.broadcast %7 : vector<8x1xf32> to vector<8x256xf32>
    %57 = arith.addf %55, %56 : vector<8x256xf32>
    %cst_17 = arith.constant 0.000000e+00 : f32
    %58 = vector.broadcast %cst_17 : f32 to vector<8x256xf32>
    %59 = arith.maximumf %57, %58 : vector<8x256xf32>
    %60 = arith.truncf %59 : vector<8x256xf32> to vector<8x256xbf16>
    %cst_18 = arith.constant dense<0.000000e+00> : vector<16x256xf32>
    %61 = tpu.matmul %6, %60, %cst_18 {dimension_numbers = #tpu.dot_dimension_numbers<[1], [0], [0], [1], [0, 0, 1, 1], [], []>} : vector<16x8xbf16>, vector<8x256xbf16>, vector<16x256xf32> -> vector<16x256xf32>
    %62 = vector.broadcast %8 : vector<16x1xf32> to vector<16x256xf32>
    %63 = arith.addf %61, %62 : vector<16x256xf32>
    %c0_19 = arith.constant 0 : index
    %c0_20 = arith.constant 0 : index
    %64 = vector.load %arg8[%c0_19, %c0_20] : memref<16x256xf32, #tpu.memory_space<vmem>>, vector<16x256xf32>
    %65 = arith.addf %64, %63 : vector<16x256xf32>
    %c0_21 = arith.constant 0 : index
    %c0_22 = arith.constant 0 : index
    %66 = vector.load %arg8[%c0_21, %c0_22] : memref<16x256xf32, #tpu.memory_space<vmem>>, vector<16x256xf32>
    tpu.vector_store %arg8[%c0_21, %c0_22], %65 {strides = array<i32>} : memref<16x256xf32, #tpu.memory_space<vmem>>, vector<16x256xf32>,
    %c0_23 = arith.constant 0 : index
    %c0_24 = arith.constant 0 : index
    %67 = vector.load %arg8[%c0_23, %c0_24] : memref<16x256xf32, #tpu.memory_space<vmem>>, vector<16x256xf32>
    %cst_25 = arith.constant 0.000000e+00 : f32
    %68 = vector.broadcast %cst_25 : f32 to vector<16x256xf32>
    %69 = arith.maximumf %67, %68 : vector<16x256xf32>
    %c17_i32_26 = arith.constant 17 : i32
    %70 = tpu.dynamic_rotate %69 by %c17_i32_26 dim 1 : vector<16x256xf32>, i32 -> vector<16x256xf32>
    %71 = vector.extract_strided_slice %9 {offsets = [0, 0], sizes = [1, 256], strides = [1, 1]} : vector<9x256xf32> to vector<1x256xf32>
    %72 = vector.broadcast %71 : vector<1x256xf32> to vector<16x256xf32>
    %73 = arith.mulf %70, %72 : vector<16x256xf32>
    %74 = arith.truncf %73 : vector<16x256xf32> to vector<16x256xbf16>
    %c16_i32_27 = arith.constant 16 : i32
    %75 = tpu.dynamic_rotate %69 by %c16_i32_27 dim 1 : vector<16x256xf32>, i32 -> vector<16x256xf32>
    %76 = vector.extract_strided_slice %9 {offsets = [1, 0], sizes = [1, 256], strides = [1, 1]} : vector<9x256xf32> to vector<1x256xf32>
    %77 = vector.broadcast %76 : vector<1x256xf32> to vector<16x256xf32>
    %78 = arith.mulf %75, %77 : vector<16x256xf32>
    %79 = arith.truncf %78 : vector<16x256xf32> to vector<16x256xbf16>
    %c15_i32_28 = arith.constant 15 : i32
    %80 = tpu.dynamic_rotate %69 by %c15_i32_28 dim 1 : vector<16x256xf32>, i32 -> vector<16x256xf32>
    %81 = vector.extract_strided_slice %9 {offsets = [2, 0], sizes = [1, 256], strides = [1, 1]} : vector<9x256xf32> to vector<1x256xf32>
    %82 = vector.broadcast %81 : vector<1x256xf32> to vector<16x256xf32>
    %83 = arith.mulf %80, %82 : vector<16x256xf32>
    %84 = arith.truncf %83 : vector<16x256xf32> to vector<16x256xbf16>
    %c1_i32_29 = arith.constant 1 : i32
    %85 = tpu.dynamic_rotate %69 by %c1_i32_29 dim 1 : vector<16x256xf32>, i32 -> vector<16x256xf32>
    %86 = vector.extract_strided_slice %9 {offsets = [3, 0], sizes = [1, 256], strides = [1, 1]} : vector<9x256xf32> to vector<1x256xf32>
    %87 = vector.broadcast %86 : vector<1x256xf32> to vector<16x256xf32>
    %88 = arith.mulf %85, %87 : vector<16x256xf32>
    %89 = arith.truncf %88 : vector<16x256xf32> to vector<16x256xbf16>
    %90 = arith.truncf %69 : vector<16x256xf32> to vector<16x256xbf16>
    %c255_i32_30 = arith.constant 255 : i32
    %91 = tpu.dynamic_rotate %69 by %c255_i32_30 dim 1 : vector<16x256xf32>, i32 -> vector<16x256xf32>
    %92 = vector.extract_strided_slice %9 {offsets = [5, 0], sizes = [1, 256], strides = [1, 1]} : vector<9x256xf32> to vector<1x256xf32>
    %93 = vector.broadcast %92 : vector<1x256xf32> to vector<16x256xf32>
    %94 = arith.mulf %91, %93 : vector<16x256xf32>
    %95 = arith.truncf %94 : vector<16x256xf32> to vector<16x256xbf16>
    %c241_i32_31 = arith.constant 241 : i32
    %96 = tpu.dynamic_rotate %69 by %c241_i32_31 dim 1 : vector<16x256xf32>, i32 -> vector<16x256xf32>
    %97 = vector.extract_strided_slice %9 {offsets = [6, 0], sizes = [1, 256], strides = [1, 1]} : vector<9x256xf32> to vector<1x256xf32>
    %98 = vector.broadcast %97 : vector<1x256xf32> to vector<16x256xf32>
    %99 = arith.mulf %96, %98 : vector<16x256xf32>
    %100 = arith.truncf %99 : vector<16x256xf32> to vector<16x256xbf16>
    %c240_i32_32 = arith.constant 240 : i32
    %101 = tpu.dynamic_rotate %69 by %c240_i32_32 dim 1 : vector<16x256xf32>, i32 -> vector<16x256xf32>
    %102 = vector.extract_strided_slice %9 {offsets = [7, 0], sizes = [1, 256], strides = [1, 1]} : vector<9x256xf32> to vector<1x256xf32>
    %103 = vector.broadcast %102 : vector<1x256xf32> to vector<16x256xf32>
    %104 = arith.mulf %101, %103 : vector<16x256xf32>
    %105 = arith.truncf %104 : vector<16x256xf32> to vector<16x256xbf16>
    %c239_i32_33 = arith.constant 239 : i32
    %106 = tpu.dynamic_rotate %69 by %c239_i32_33 dim 1 : vector<16x256xf32>, i32 -> vector<16x256xf32>
    %107 = vector.extract_strided_slice %9 {offsets = [8, 0], sizes = [1, 256], strides = [1, 1]} : vector<9x256xf32> to vector<1x256xf32>
    %108 = vector.broadcast %107 : vector<1x256xf32> to vector<16x256xf32>
    %109 = arith.mulf %106, %108 : vector<16x256xf32>
    %110 = arith.truncf %109 : vector<16x256xf32> to vector<16x256xbf16>
    %111 = tpu.concatenate %74, %79, %84, %89, %90, %95, %100, %105, %110 in 0 : vector<16x256xbf16>, vector<16x256xbf16>, vector<16x256xbf16>, vector<16x256xbf16>, vector<16x256xbf16>, vector<16x256xbf16>, vector<16x256xbf16>, vector<16x256xbf16>, vector<16x256xbf16> -> vector<144x256xbf16>
    %cst_34 = arith.constant dense<0.000000e+00> : vector<8x256xf32>
    %112 = tpu.matmul %4, %111, %cst_34 {dimension_numbers = #tpu.dot_dimension_numbers<[1], [0], [0], [1], [0, 0, 1, 1], [], []>} : vector<8x144xbf16>, vector<144x256xbf16>, vector<8x256xf32> -> vector<8x256xf32>
    %113 = vector.broadcast %7 : vector<8x1xf32> to vector<8x256xf32>
    %114 = arith.addf %112, %113 : vector<8x256xf32>
    %cst_35 = arith.constant 0.000000e+00 : f32
    %115 = vector.broadcast %cst_35 : f32 to vector<8x256xf32>
    %116 = arith.maximumf %114, %115 : vector<8x256xf32>
    %117 = arith.truncf %116 : vector<8x256xf32> to vector<8x256xbf16>
    %cst_36 = arith.constant dense<0.000000e+00> : vector<16x256xf32>
    %118 = tpu.matmul %6, %117, %cst_36 {dimension_numbers = #tpu.dot_dimension_numbers<[1], [0], [0], [1], [0, 0, 1, 1], [], []>} : vector<16x8xbf16>, vector<8x256xbf16>, vector<16x256xf32> -> vector<16x256xf32>
    %119 = vector.broadcast %8 : vector<16x1xf32> to vector<16x256xf32>
    %120 = arith.addf %118, %119 : vector<16x256xf32>
    %c0_37 = arith.constant 0 : index
    %c0_38 = arith.constant 0 : index
    %121 = vector.load %arg8[%c0_37, %c0_38] : memref<16x256xf32, #tpu.memory_space<vmem>>, vector<16x256xf32>
    %122 = arith.addf %121, %120 : vector<16x256xf32>
    %c0_39 = arith.constant 0 : index
    %c0_40 = arith.constant 0 : index
    %123 = vector.load %arg8[%c0_39, %c0_40] : memref<16x256xf32, #tpu.memory_space<vmem>>, vector<16x256xf32>
    tpu.vector_store %arg8[%c0_39, %c0_40], %122 {strides = array<i32>} : memref<16x256xf32, #tpu.memory_space<vmem>>, vector<16x256xf32>,
    %c0_41 = arith.constant 0 : index
    %c0_42 = arith.constant 0 : index
    %124 = vector.load %arg8[%c0_41, %c0_42] : memref<16x256xf32, #tpu.memory_space<vmem>>, vector<16x256xf32>
    %cst_43 = arith.constant 0.000000e+00 : f32
    %125 = vector.broadcast %cst_43 : f32 to vector<16x256xf32>
    %126 = arith.maximumf %124, %125 : vector<16x256xf32>
    %c0_44 = arith.constant 0 : index
    %c0_45 = arith.constant 0 : index
    %c0_46 = arith.constant 0 : index
    %127 = vector.load %arg7[%c0_44, %c0_45, %c0_46] : memref<1x16x256xf32, #tpu.memory_space<vmem>>, vector<1x16x256xf32>
    %128 = vector.shape_cast %127 : vector<1x16x256xf32> to vector<16x256xf32>
    %129 = vector.shape_cast %126 : vector<16x256xf32> to vector<1x16x256xf32>
    tpu.vector_store %arg7[%c0_44, %c0_45, %c0_46], %129 {strides = array<i32>} : memref<1x16x256xf32, #tpu.memory_space<vmem>>, vector<1x16x256xf32>,
    return
  }
  func.func @transform_0(%arg0: i32) -> (i32, i32, i32) {
    %c0_i32 = arith.constant 0 : i32
    %c0_i32_0 = arith.constant 0 : i32
    %c0_i32_1 = arith.constant 0 : i32
    return %arg0, %c0_i32, %c0_i32_0 : i32, i32, i32
  }
  func.func @transform_1(%arg0: i32) -> (i32, i32) {
    %c0_i32 = arith.constant 0 : i32
    %c0_i32_0 = arith.constant 0 : i32
    %c0_i32_1 = arith.constant 0 : i32
    return %c0_i32, %c0_i32_0 : i32, i32
  }
  func.func @transform_2(%arg0: i32) -> (i32, i32) {
    %c0_i32 = arith.constant 0 : i32
    %c0_i32_0 = arith.constant 0 : i32
    %c0_i32_1 = arith.constant 0 : i32
    return %c0_i32, %c0_i32_0 : i32, i32
  }
  func.func @transform_3(%arg0: i32) -> (i32, i32) {
    %c0_i32 = arith.constant 0 : i32
    %c0_i32_0 = arith.constant 0 : i32
    %c0_i32_1 = arith.constant 0 : i32
    return %c0_i32, %c0_i32_0 : i32, i32
  }
  func.func @transform_4(%arg0: i32) -> (i32, i32) {
    %c0_i32 = arith.constant 0 : i32
    %c0_i32_0 = arith.constant 0 : i32
    %c0_i32_1 = arith.constant 0 : i32
    return %c0_i32, %c0_i32_0 : i32, i32
  }
  func.func @transform_5(%arg0: i32) -> (i32, i32) {
    %c0_i32 = arith.constant 0 : i32
    %c0_i32_0 = arith.constant 0 : i32
    %c0_i32_1 = arith.constant 0 : i32
    return %c0_i32, %c0_i32_0 : i32, i32
  }
  func.func @transform_6(%arg0: i32) -> (i32, i32, i32) {
    %c0_i32 = arith.constant 0 : i32
    %c0_i32_0 = arith.constant 0 : i32
    %c0_i32_1 = arith.constant 0 : i32
    return %arg0, %c0_i32, %c0_i32_0 : i32, i32, i32
  }
}

</mosaic_0001>

<bundles_post_ra>
// kernel: tpu_custom_call.1
= control target key start
LH: loop header
LB: loop body
LE: loop exit
PB: predicated region body
PF: predicated region fallthrough
CT: control target
= control target key end

     0   :  { %11 = vsyncpa [#allocation4], 0  ;;  %s1956_s0 = inlined_call_operand.hbm [shape: f32[2,16,256], index: 0, kind: input, shape index: {}]   ;;  %s1957_s1 = inlined_call_operand.vmem [shape: f32[8,144], index: 1, kind: input, shape index: {}]   ;;  %s1958_s2 = inlined_call_operand.vmem [shape: f32[8,1], index: 2, kind: input, shape index: {}]   ;;  %s1959_s3 = inlined_call_operand.vmem [shape: f32[16,8], index: 3, kind: input, shape index: {}]   ;;  %s1960_s4 = inlined_call_operand.vmem [shape: f32[16,1], index: 4, kind: input, shape index: {}]   ;;  %s1961_s5 = inlined_call_operand.vmem [shape: f32[9,256], index: 5, kind: input, shape index: {}]   ;;  %s1962_s6 = inlined_call_operand.hbm [shape: f32[2,16,256], index: 6, kind: output, shape index: {}]  }
   0x1   :  { %13 = vsyncpa [#allocation4 + $0x1], 0 }
   0x2   :  { %14 = vsyncpa [#allocation5], 0 }
   0x3   :  { %16 = vsyncpa [#allocation5 + $0x1], 0  ;;  %s1233_s21 = smov 0   ;;  %s1235_s22 = smov 0  }
   0x4   :  { %s1237_s23 = smov 0   ;;  %s1239_s24 = smov 0  }
   0x5 LB: > { %s1254_s25 = sadd.s32 4294967295, %s1182_s24   ;;  %s1002_s26 = sadd.s32 4294967294, %s1182_s24   ;;  %s1182_s24 = sphi %s1239_s24, %s1977_s24   ;;  %s1178_s23 = sphi %s1237_s23, %s1976_s23   ;;  %s1174_s22 = sphi %s1235_s22, %s1975_s22   ;;  %s1170_s21 = sphi %s1233_s21, %s1974_s21  }
   0x6   : > { %s1258_s27 = sadd.s32 1, %s1182_s24   ;;  %s29_s28 = sadd.s32 1, %s1178_s23 }
   0x7   : > { %s26_s29 = ssub.s32 %s1182_s24, %s1258_s27  ;;  %p36_p0 = scmp.ne.s32.totalorder %s1178_s23, %s1174_s22 }
   0x8   : > { %p27_p1 = scmp.eq.s32.totalorder %s26_s29, 0  ;;  %p37_p2 = scmp.eq.s32.totalorder %s1182_s24, 0 }
   0x9   : > { %p42_p3 = scmp.ne.s32.totalorder %s1174_s22, %s1170_s21  ;;  %p43_p4 = scmp.eq.s32.totalorder %s1254_s25, 0 }
   0xa   : > { %s1270_s30 = scalar_select %p27_p1, %s1178_s23, %s29_s28  }
   0xb   : > { %p1272_p5 = por %p37_p2, %p36_p0  ;;  %p1276_p6 = por %p43_p4, %p42_p3 }
   0xc   : > { %p171_p7 = scmp.eq.s32.totalorder %s1254_s25, 1  ;;  %p177_p8 = scmp.eq.s32.totalorder %s1002_s26, 1 }
   0xd   : > { %p1038_p10 = scmp.lt.s32.totalorder %s1182_s24, 2  ;;  %s212_s11 = sand.u32 1, %s1178_s23  }
   0xe   : > { %p1283_p11 = por %p171_p7, %p36_p0  ;;  %p1287_p12 = por %p177_p8, %p42_p3 }
   0xf   : > { %s1024_s12 = sshll.u32 %s1182_s24, 9  ;;  %s1005_s13 = sshll.u32 %s212_s11, 5 }
  0x10   : > { %s1967_s9 = scalar_select %p1283_p11, 1, 0 }
  0x11   : > { %s1968_s10 = scalar_select %p1287_p12, 1, 0 }
  0x12   : > { %s1296_s16 = scalar_lea.hbm %s1956_s0, %s1024_s12  ;;  %s216_s17 = scalar_lea.vmem [#allocation3], %s1005_s13 }
  0x13   : > { %s223_s18 = sshll.u32 %s216_s17, 4  ;;  %p1300_p13 = pnand %p1038_p10, %p1272_p5  ;;  %s1304_s18 = int_to_ptr.vmem [resolvable:$true] %s223_s18 }
  0x14   : > { %s1306_s20 = scalar_lea.sflag [#allocation4], %s212_s11  ;;  %s1086_s26 = scalar_lea.hbm %s1296_s16, 512 }
  0x15   : > { %p1087_p0 = scmp.ne.s32.totalorder %s1296_s16, %s1086_s26  ;;  %p1088_p1 = pneg %p1300_p13 }
  0x16   : > { %s1091_s7 = scalar_lea.hbm %s1956_s0, 1024  ;;  %p1092_p4 = scmp.lt.u32.totalorder %s1296_s16, %s1956_s0 }
  0x17   : > { %p1089_p2 = pnand %p1088_p1, %p1087_p0  ;;  %p1093_p5 = scmp.lt.u32.totalorder %s1091_s7, %s1086_s26 }
  0x18   : > { %p1095_p8 = scmp.lt.u32.totalorder %s1086_s26, %s1296_s16 }
  0x19   : > { %p1090_p3 = pneg %p1089_p2  ;;  %p1094_p7 = por %p1093_p5, %p1092_p4 }
  0x1b   : > { %p1096_p10 = por %p1095_p8, %p1094_p7 }
  0x1d   : > { %p1097_p9 = pnand %p1096_p10, %p1090_p3 }
  0x1f   : > { %1100 = shalt.err (!%p1097_p9)
}
  0x20   : > { %s1101_s11 = scalar_lea.vmem %s1304_s18, 512  ;;  %s1184_s14 = smov [#allocation3]  }
  0x21   : > { %p1102_p0 = scmp.ne.s32.totalorder %s1304_s18, %s1101_s11  ;;  %s1106_s15 = sshll.u32 %s1184_s14, 4  ;;  %s1107_s15 = int_to_ptr.vmem [resolvable:$false] %s1106_s15 }
  0x22   : > { %s1108_s17 = scalar_lea.vmem %s1107_s15, 1024  ;;  %p1109_p11 = scmp.lt.s32.totalorder %s1304_s18, %s1107_s15 }
  0x23   : > { %p1104_p2 = pnand %p1102_p0, %p1088_p1  ;;  %p1110_p4 = scmp.lt.s32.totalorder %s1108_s17, %s1101_s11 }
  0x25   : > { %p1105_p12 = pneg %p1104_p2  ;;  %p1111_p5 = por %p1110_p4, %p1109_p11 }
  0x27   : > { %p1112_p7 = pnand %p1111_p5, %p1105_p12 }
  0x29   : > { %1115 = shalt.err (!%p1112_p7)
}
  0x2a   : > { %s1185_s26 = smov 256   ;;  %s1186_s28 = smov 16  }
  0x2b   : > { %1033 = dma.hbm_to_vmem [thread:$0]  (!%p1300_p13), %s1296_s16, 512, %s1304_s18, %s1306_s20, %s1185_s26, %s1185_s26, %s1186_s28  }
  0x2c   : > { %p1008_p9 = scmp.ge.s32.totalorder %s1182_s24, 1  ;;  %p231_p1 = scmp.lt.s32.totalorder %s1182_s24, 3 }
  0x2e   : > { %p232_p3 = pnand %p1008_p9, %p231_p1 }
  0x2f   : > { %s1337_s29 = sand.u32 (!%p232_p3), 1, %s1174_s22  }
  0x30   : > { %235 = sbr.rel (%p232_p3) target bundleno = 1329 (0x531), region = 44  ;;  %s1964_s7 = sshll.u32 (!%p232_p3), %s1337_s29, 5 }
  0x31   : > { %s238_s12 = scalar_lea.sflag (!%p232_p3), [#allocation4], %s1337_s29  ;;  %s241_s13 = scalar_lea.vmem (!%p232_p3), [#allocation3], %s1964_s7 }
  0x37   : > { %1161 = dma.done.wait (%p1276_p6), %s238_s12, 512  }
  0x38   : > { %1163 = vsyncadd (%p1276_p6), %s238_s12, 4294966784  ;;  %v1347_v0 = vld [vmem:[%s241_s13 + $0x8] sm:$0xff]  ;;  %v1349_v1 = vld [vmem:[%s241_s13] sm:$0xff]  ;;  %s1187_s16 = smov 17   ;;  %s1188_s8 = smov 16   ;;  %vm526_vm0 = vcmask 130048   ;;  %v309_v14 = vlaneseq }
  0x39   : > { %v1351_v2 = vld [vmem:[%s241_s13 + $0x18] sm:$0xff]  ;;  %v1354_v3 = vmax.f32 %v1347_v0, 0.0  ;;  %v1357_v4 = vmax.f32 %v1349_v1, 0.0  ;;  %v1359_v5 = vld [vmem:[%s241_s13 + $0x10] sm:$0xff]  ;;  %s1189_s18 = smov 15   ;;  %s1190_s19 = smov 1  }
  0x3a   : > { %v1366_v6 = vmax.f32 %v1351_v2, 0.0  ;;  %v1369_v7 = vmax.f32 %v1359_v5, 0.0  ;;  %s1191_s20 = smov 127   ;;  %s1192_s11 = smov 113   ;;  %v280_v10 = vld [vmem:[%s1957_s1 + $0x8] sm:$0xff]  ;;  %v1195_v12 = vmov 0  }
  0x3b   : > { %305 = vrot.lane.b32.xlu1 %v1354_v3, %s1187_s16  ;;  %301 = vrot.lane.b32.xlu0 %v1357_v4, %s1187_s16  ;;  %s1193_s14 = smov 112   ;;  %v1430_v11 = vpack.c.bf16 %v280_v10, %v280_v10  ;;  %s1194_s26 = smov 111   ;;  %v286_v13 = vld [vmem:[%s1958_s2] sm:$0xff]  ;;  %v1448_v15 = vshrl.u32 %v309_v14, 7  ;;  %v1450_v16 = vand.u32 127, %v309_v14  ;;  %v1461_v19 = vld [vmem:[%s1961_s5 + $0x8] sm:$0xff] }
  0x3c   : > { %v412_v8 = vpack.c.bf16 %v1366_v6, %v1354_v3  ;;  %v411_v9 = vpack.c.bf16 %v1369_v7, %v1357_v4  ;;  %1084 = vset.pattern.permute.xlu0 %v1195_v12  ;;  %628 = vmatprep.mubr.bf16.mxu1 %v1195_v12  ;;  %v1456_v18 = vld [vmem:[%s1961_s5] sm:$0xff]  ;;  %vm589_vm9 = vcmask 1043456   ;;  %vm585_vm10 = vcmask 64512   ;;  %p1971_p11 = scmp.ne.s32.totalorder %s1967_s9, 0  ;;  %s1196_s13 = smov [#allocation6]  }
  0x3d   : > { %1013 = vmatprep.mubr.msk.bf16.mxu0 %vm526_vm0, %v1430_v11  ;;  %1085 = vset.pattern.permute.xlu1 %v1195_v12  ;;  %v318_v17 = vsub.s32 0, %v1448_v15  ;;  %vm311_vm1 = vcmp.lt.s32.totalorder %v1450_v16, 17  ;;  %v345_v30 = vsub.s32 1, %v1448_v15  ;;  %vm338_vm2 = vcmp.lt.s32.totalorder %v1450_v16, 16  ;;  %s1120_s15 = sshll.u32 %s1196_s13, 4  ;;  %s1121_s15 = int_to_ptr.vmem [resolvable:$false] %s1120_s15 }
  0x3e   : > { %v372_v43 = vsub.s32 2, %v1448_v15  ;;  %vm365_vm3 = vcmp.lt.s32.totalorder %v1450_v16, 15  ;;  %v399_v60 = vsub.s32 3, %v1448_v15  ;;  %vm392_vm4 = vcmp.lt.s32.totalorder %v1450_v16, 1  ;;  %s1122_s17 = scalar_lea.vmem %s1121_s15, 1024 }
  0x3f   : > { %307 = vrot.lane.b32.xlu1 %v1366_v6, %s1187_s16  ;;  %303 = vrot.lane.b32.xlu0 %v1369_v7, %s1187_s16  ;;  %v1465_v22 = vrot.slane %v1456_v18, %v318_v17  ;;  %v1468_v23 = vrot.slane %v1461_v19, %v318_v17  ;;  %v1485_v39 = vrot.slane %v1456_v18, %v345_v30  ;;  %vm421_vm5 = vcmp.lt.s32.totalorder %v1450_v16, 127 }
  0x40   : > { %v1488_v40 = vrot.slane %v1461_v19, %v345_v30  ;;  %v1505_v56 = vrot.slane %v1456_v18, %v372_v43  ;;  %v1508_v57 = vrot.slane %v1461_v19, %v372_v43  ;;  %vm448_vm6 = vcmp.lt.s32.totalorder %v1450_v16, 113 }
  0x41   : > { %vm475_vm7 = vcmp.lt.s32.totalorder %v1450_v16, 112  ;;  %vm502_vm8 = vcmp.lt.s32.totalorder %v1450_v16, 111 }
  0x43   : > { %332 = vrot.lane.b32.xlu1 %v1369_v7, %s1188_s8  ;;  %330 = vrot.lane.b32.xlu0 %v1357_v4, %s1188_s8 }
  0x47   : > { %336 = vrot.lane.b32.xlu1 %v1366_v6, %s1188_s8  ;;  %334 = vrot.lane.b32.xlu0 %v1354_v3, %s1188_s8 }
  0x4b   : > { %359 = vrot.lane.b32.xlu1 %v1369_v7, %s1189_s18  ;;  %357 = vrot.lane.b32.xlu0 %v1357_v4, %s1189_s18 }
  0x4f   : > { %363 = vrot.lane.b32.xlu1 %v1366_v6, %s1189_s18  ;;  %361 = vrot.lane.b32.xlu0 %v1354_v3, %s1189_s18 }
  0x53   : > { %386 = vrot.lane.b32.xlu1 %v1369_v7, %s1190_s19  ;;  %384 = vrot.lane.b32.xlu0 %v1357_v4, %s1190_s19 }
  0x57   : > { %390 = vrot.lane.b32.xlu1 %v1366_v6, %s1190_s19  ;;  %388 = vrot.lane.b32.xlu0 %v1354_v3, %s1190_s19 }
  0x5b   : > { %415 = vrot.lane.b32.xlu1 %v1369_v7, %s1191_s20  ;;  %413 = vrot.lane.b32.xlu0 %v1357_v4, %s1191_s20 }
  0x5f   : > { %419 = vrot.lane.b32.xlu1 %v1366_v6, %s1191_s20  ;;  %417 = vrot.lane.b32.xlu0 %v1354_v3, %s1191_s20 }
  0x63   : > { %442 = vrot.lane.b32.xlu1 %v1369_v7, %s1192_s11  ;;  %440 = vrot.lane.b32.xlu0 %v1357_v4, %s1192_s11 }
  0x67   : > { %446 = vrot.lane.b32.xlu1 %v1366_v6, %s1192_s11  ;;  %444 = vrot.lane.b32.xlu0 %v1354_v3, %s1192_s11 }
  0x6b   : > { %469 = vrot.lane.b32.xlu1 %v1369_v7, %s1193_s14  ;;  %467 = vrot.lane.b32.xlu0 %v1357_v4, %s1193_s14 }
  0x6f   : > { %473 = vrot.lane.b32.xlu1 %v1366_v6, %s1193_s14  ;;  %471 = vrot.lane.b32.xlu0 %v1354_v3, %s1193_s14 }
  0x73   : > { %496 = vrot.lane.b32.xlu1 %v1369_v7, %s1194_s26  ;;  %494 = vrot.lane.b32.xlu0 %v1357_v4, %s1194_s26 }
  0x77   : > { %500 = vrot.lane.b32.xlu1 %v1366_v6, %s1194_s26  ;;  %498 = vrot.lane.b32.xlu0 %v1354_v3, %s1194_s26 }
  0x7b   : > { %523 = vperm.xlu0 %1084, %v286_v13  }
  0xad   : > { %v306_v20 = vpop.permute.xlu1 %305  ;;  %v302_v21 = vpop.permute.xlu0 %301 }
  0xae   : > { %v312_v24 = vsel %vm311_vm1, %v302_v21, %v306_v20  ;;  %v314_v25 = vsel %vm311_vm1, %v306_v20, %v302_v21 }
  0xaf   : > { %v324_v31 = vmul.f32 %v1465_v22, %v314_v25  ;;  %v325_v33 = vmul.f32 %v1468_v23, %v312_v24 }
  0xb1   : > { %v308_v26 = vpop.permute.xlu1 %307  ;;  %v304_v27 = vpop.permute.xlu0 %303 }
  0xb2   : > { %v313_v28 = vsel %vm311_vm1, %v304_v27, %v308_v26  ;;  %v315_v29 = vsel %vm311_vm1, %v308_v26, %v304_v27  ;;  %v1525_v27 = vrot.slane %v1456_v18, %v399_v60 }
  0xb3   : > { %v326_v32 = vmul.f32 %v1465_v22, %v315_v29  ;;  %v327_v34 = vmul.f32 %v1468_v23, %v313_v28  ;;  %v1528_v28 = vrot.slane %v1461_v19, %v399_v60 }
  0xb5   : > { %v333_v35 = vpop.permute.xlu1 %332  ;;  %v331_v36 = vpop.permute.xlu0 %330  ;;  %v329_v37 = vpack.c.bf16 %v327_v34, %v325_v33  ;;  %v328_v38 = vpack.c.bf16 %v326_v32, %v324_v31  ;;  %v428_v31 = vsub.s32 5, %v1448_v15 }
  0xb7   : > { %530 = vmatprep.subr.bf16.mxu0 %v329_v37 }
  0xb8   : > { %531 = vmatpush1.bf16.msra.mxu0 %v328_v38 }
  0xb9   : > { %v337_v41 = vpop.permute.xlu1 %336  ;;  %v335_v42 = vpop.permute.xlu0 %334 }
  0xba   : > { %v340_v44 = vsel %vm338_vm2, %v333_v35, %v337_v41  ;;  %v342_v45 = vsel %vm338_vm2, %v337_v41, %v333_v35  ;;  %v339_v46 = vsel %vm338_vm2, %v331_v36, %v335_v42  ;;  %v341_v47 = vsel %vm338_vm2, %v335_v42, %v331_v36 }
  0xbb   : > { %v353_v48 = vmul.f32 %v1485_v39, %v342_v45  ;;  %v354_v49 = vmul.f32 %v1488_v40, %v340_v44  ;;  %v351_v50 = vmul.f32 %v1485_v39, %v341_v47  ;;  %v352_v51 = vmul.f32 %v1488_v40, %v339_v46 }
  0xbc   : > { %v1545_v46 = vrot.slane %v1456_v18, %v428_v31  ;;  %v1548_v47 = vrot.slane %v1461_v19, %v428_v31 }
  0xbd   : > { %v360_v52 = vpop.permute.xlu1 %359  ;;  %v358_v53 = vpop.permute.xlu0 %357  ;;  %v356_v54 = vpack.c.bf16 %v354_v49, %v352_v51  ;;  %v355_v55 = vpack.c.bf16 %v353_v48, %v351_v50  ;;  %v455_v50 = vsub.s32 6, %v1448_v15 }
  0xbf   : > { %532 = vmatprep.subr.bf16.mxu0 %v356_v54 }
  0xc0   : > { %533 = vmatpush1.bf16.msra.mxu0 %v355_v55 }
  0xc1   : > { %v364_v58 = vpop.permute.xlu1 %363  ;;  %v362_v59 = vpop.permute.xlu0 %361 }
  0xc2   : > { %v367_v61 = vsel %vm365_vm3, %v360_v52, %v364_v58  ;;  %v369_v62 = vsel %vm365_vm3, %v364_v58, %v360_v52  ;;  %v366_v63 = vsel %vm365_vm3, %v358_v53, %v362_v59  ;;  %v368_v10 = vsel %vm365_vm3, %v362_v59, %v358_v53 }
  0xc3   : > { %v380_v13 = vmul.f32 %v1505_v56, %v369_v62  ;;  %v381_v14 = vmul.f32 %v1508_v57, %v367_v61  ;;  %v378_v17 = vmul.f32 %v1505_v56, %v368_v10  ;;  %v379_v20 = vmul.f32 %v1508_v57, %v366_v63 }
  0xc4   : > { %v1571_v62 = vrot.slane %v1456_v18, %v455_v50  ;;  %v1574_v63 = vrot.slane %v1461_v19, %v455_v50  ;;  %v1617_v50 = vld [vmem:[%s1961_s5 + $0x18] ss:$0 sm:$0xff] }
  0xc5   : > { %v387_v21 = vpop.permute.xlu1 %386  ;;  %v385_v24 = vpop.permute.xlu0 %384  ;;  %v383_v25 = vpack.c.bf16 %v381_v14, %v379_v20  ;;  %v382_v26 = vpack.c.bf16 %v380_v13, %v378_v17  ;;  %v482_v14 = vsub.s32 7, %v1448_v15 }
  0xc7   : > { %534 = vmatprep.subr.bf16.mxu0 %v383_v25  ;;  %v1591_v31 = vrot.slane %v1456_v18, %v482_v14 }
  0xc8   : > { %535 = vmatpush1.bf16.msra.mxu0 %v382_v26 }
  0xc9   : > { %v391_v29 = vpop.permute.xlu1 %390  ;;  %v389_v30 = vpop.permute.xlu0 %388 }
  0xca   : > { %v394_v32 = vsel %vm392_vm4, %v387_v21, %v391_v29  ;;  %v396_v33 = vsel %vm392_vm4, %v391_v29, %v387_v21  ;;  %v393_v34 = vsel %vm392_vm4, %v385_v24, %v389_v30  ;;  %v395_v35 = vsel %vm392_vm4, %v389_v30, %v385_v24 }
  0xcb   : > { %v407_v36 = vmul.f32 %v1525_v27, %v396_v33  ;;  %v408_v37 = vmul.f32 %v1528_v28, %v394_v32  ;;  %v405_v38 = vmul.f32 %v1525_v27, %v395_v35  ;;  %v406_v41 = vmul.f32 %v1528_v28, %v393_v34 }
  0xcc   : > { %v1594_v32 = vrot.slane %v1461_v19, %v482_v14  ;;  %v287_v14 = vld [vmem:[%s1960_s4] sm:$0xff] }
  0xcd   : > { %v416_v42 = vpop.permute.xlu1 %415  ;;  %v414_v43 = vpop.permute.xlu0 %413  ;;  %v410_v44 = vpack.c.bf16 %v408_v37, %v406_v41  ;;  %v409_v45 = vpack.c.bf16 %v407_v36, %v405_v38  ;;  %577 = vperm.xlu1 %1085, %v287_v14  }
  0xcf   : > { %536 = vmatprep.subr.bf16.mxu0 %v410_v44 }
  0xd0   : > { %537 = vmatpush1.bf16.msra.mxu0 %v409_v45 }
  0xd1   : > { %v420_v48 = vpop.permute.xlu1 %419  ;;  %v418_v49 = vpop.permute.xlu0 %417  ;;  %538 = vmatprep.subr.bf16.mxu0 %v412_v8 }
  0xd2   : > { %v423_v51 = vsel %vm421_vm5, %v416_v42, %v420_v48  ;;  %v425_v52 = vsel %vm421_vm5, %v420_v48, %v416_v42  ;;  %v422_v53 = vsel %vm421_vm5, %v414_v43, %v418_v49  ;;  %v424_v54 = vsel %vm421_vm5, %v418_v49, %v414_v43  ;;  %v1612_v49 = vld [vmem:[%s1961_s5 + $0x10] ss:$0 sm:$0xff] }
  0xd3   : > { %v436_v55 = vmul.f32 %v1545_v46, %v423_v51  ;;  %v437_v58 = vmul.f32 %v1548_v47, %v425_v52  ;;  %v434_v3 = vmul.f32 %v1545_v46, %v422_v53  ;;  %v435_v6 = vmul.f32 %v1548_v47, %v424_v54 }
  0xd4   : > { %539 = vmatpush1.bf16.msra.mxu0 %v411_v9 }
  0xd5   : > { %v443_v8 = vpop.permute.xlu1 %442  ;;  %v441_v59 = vpop.permute.xlu0 %440  ;;  %v439_v60 = vpack.c.bf16 %v437_v58, %v435_v6  ;;  %v438_v61 = vpack.c.bf16 %v436_v55, %v434_v3 }
  0xd7   : > { %540 = vmatprep.subr.bf16.mxu0 %v439_v60  ;;  %v279_v60 = vld [vmem:[%s1957_s1] sm:$0xff] }
  0xd8   : > { %541 = vmatpush1.bf16.msra.mxu0 %v438_v61 }
  0xd9   : > { %v447_v10 = vpop.permute.xlu1 %446  ;;  %v445_v13 = vpop.permute.xlu0 %444 }
  0xda   : > { %v450_v4 = vsel %vm448_vm6, %v443_v8, %v447_v10  ;;  %v452_v7 = vsel %vm448_vm6, %v447_v10, %v443_v8  ;;  %v449_v9 = vsel %vm448_vm6, %v441_v59, %v445_v13  ;;  %v451_v17 = vsel %vm448_vm6, %v445_v13, %v441_v59 }
  0xdb   : > { %v463_v20 = vmul.f32 %v1571_v62, %v450_v4  ;;  %v464_v21 = vmul.f32 %v1574_v63, %v452_v7  ;;  %v461_v24 = vmul.f32 %v1571_v62, %v449_v9  ;;  %v462_v15 = vmul.f32 %v1574_v63, %v451_v17  ;;  %v288_v4 = vld [vmem:[%s1960_s4 + $0x8] sm:$0xff] }
  0xdc   : > { %v1634_v13 = vpack.c.bf16 %v279_v60, %v279_v60  ;;  %582 = vperm.xlu1 %1085, %v288_v4  }
  0xdd   : > { %v470_v25 = vpop.permute.xlu1 %469  ;;  %v468_v26 = vpop.permute.xlu0 %467  ;;  %v466_v29 = vpack.c.bf16 %v464_v21, %v462_v15  ;;  %v465_v30 = vpack.c.bf16 %v463_v20, %v461_v24 }
  0xdf   : > { %542 = vmatprep.subr.bf16.mxu0 %v466_v29  ;;  %v283_v29 = vld [vmem:[%s1959_s3] sm:$0xff] }
  0xe0   : > { %543 = vmatpush1.bf16.msra.mxu0 %v465_v30  ;;  %v284_v30 = vld [vmem:[%s1959_s3 + $0x8] sm:$0xff] }
  0xe1   : > { %v474_v33 = vpop.permute.xlu1 %473  ;;  %v472_v34 = vpop.permute.xlu0 %471 }
  0xe2   : > { %v477_v35 = vsel %vm475_vm7, %v470_v25, %v474_v33  ;;  %v479_v36 = vsel %vm475_vm7, %v474_v33, %v470_v25  ;;  %v476_v37 = vsel %vm475_vm7, %v468_v26, %v472_v34  ;;  %v478_v38 = vsel %vm475_vm7, %v472_v34, %v468_v26 }
  0xe3   : > { %v490_v18 = vmul.f32 %v1591_v31, %v477_v35  ;;  %v491_v19 = vmul.f32 %v1594_v32, %v479_v36  ;;  %v488_v41 = vmul.f32 %v1591_v31, %v476_v37  ;;  %v489_v42 = vmul.f32 %v1594_v32, %v478_v38 }
  0xe4   : > { %v1656_v35 = vpack.c.bf16 %v284_v30, %v283_v29 }
  0xe5   : > { %v497_v43 = vpop.permute.xlu1 %496  ;;  %v495_v44 = vpop.permute.xlu0 %494  ;;  %v493_v45 = vpack.c.bf16 %v491_v19, %v489_v42  ;;  %v492_v48 = vpack.c.bf16 %v490_v18, %v488_v41 }
  0xe7   : > { %544 = vmatprep.subr.bf16.mxu0 %v493_v45 }
  0xe8   : > { %545 = vmatpush1.bf16.msra.mxu0 %v492_v48 }
  0xe9   : > { %v501_v51 = vpop.permute.xlu1 %500  ;;  %v499_v52 = vpop.permute.xlu0 %498 }
  0xea   : > { %v504_v53 = vsel %vm502_vm8, %v497_v43, %v501_v51  ;;  %v506_v54 = vsel %vm502_vm8, %v501_v51, %v497_v43  ;;  %v503_v55 = vsel %vm502_vm8, %v495_v44, %v499_v52  ;;  %v505_v58 = vsel %vm502_vm8, %v499_v52, %v495_v44 }
  0xeb   : > { %v517_v3 = vmul.f32 %v1612_v49, %v504_v53  ;;  %v518_v6 = vmul.f32 %v1617_v50, %v506_v54  ;;  %v515_v8 = vmul.f32 %v1612_v49, %v503_v55  ;;  %v516_v59 = vmul.f32 %v1617_v50, %v505_v58 }
  0xed   : > { %v520_v61 = vpack.c.bf16 %v518_v6, %v516_v59  ;;  %v519_v10 = vpack.c.bf16 %v517_v3, %v515_v8 }
  0xef   : > { %546 = vmatprep.subr.bf16.mxu0 %v520_v61 }
  0xf0   : > { %547 = vmatpush1.bf16.msra.mxu0 %v519_v10 }
  0xf3   : > { %563 = vmatmul.mubr.bf16.vlgmr.msra.gmra.mrb[0].mxu0 %v1634_v13 }
  0xf4   : > { %884 = vmatprep.mubr.bf16.mxu0 %v1195_v12 }
  0xfa   : > { %v1644_v7 = vpop.permute.xlu0 %523 }
 0x14c   : > { %v1662_v36 = vpop.permute.xlu1 %577 }
 0x15b   : > { %v1665_v19 = vpop.permute.xlu1 %582 }
 0x1c6   : > { %v564_v9 = vpop.f32.mrb[0].mxu0 }
 0x1c7   : > { %v565_v17 = vadd.f32 %v564_v9, %v1644_v7  ;;  %v566_v20 = vpop.f32.mrb[1].mxu0 }
 0x1c8   : > { %v567_v21 = vadd.f32 %v566_v20, %v1644_v7  ;;  %v568_v24 = vpop.f32.mrb[2].mxu0 }
 0x1c9   : > { %v571_v12 = vmax.f32 %v565_v17, 0.0  ;;  %v569_v15 = vpop.f32.mrb[3].mxu0 }
 0x1ca   : > { %v572_v25 = vmax.f32 %v567_v21, 0.0 }
 0x1cb   : > { %v573_v26 = vpack.c.bf16 %v571_v12, %v571_v12 }
 0x1cc   : > { %v574_v33 = vpack.c.bf16 %v572_v25, %v572_v25 }
 0x1cd   : > { %v591_v34 = vsel %vm589_vm9, %v573_v26, 0 }
 0x1ce   : > { %1014 = vmatprep.subr.msk.bf16.mxu1 %vm589_vm9, %v574_v33 }
 0x1cf   : > { %597 = vmatpush1.bf16.msra.mxu1 %v591_v34 }
 0x1d2   : > { %1015 = vmatmul.mubr.msk.bf16.vlgmr.msra.gmra.mrb[0].mxu1 %vm585_vm10, %v1656_v35 }
 0x1d3   : > { %1016 = vmatprep.mubr.msk.bf16.mxu1 %vm526_vm0, %v1430_v11 }
 0x2a5   : > { %v630_v37 = vpop.f32.mrb[0].mxu1 }
 0x2a6   : > { %v631_v38 = vadd.f32 %v630_v37, %v1662_v36  ;;  %v632_v18 = vpop.f32.mrb[1].mxu1 }
 0x2a7   : > { %v633_v41 = vadd.f32 %v632_v18, %v1662_v36  ;;  %v634_v42 = vpop.f32.mrb[2].mxu1 }
 0x2a8   : > { %v1669_v43 = vadd.f32 %v631_v38, %v1349_v1  ;;  %v635_v44 = vadd.f32 %v634_v42, %v1665_v19  ;;  %v636_v45 = vpop.f32.mrb[3].mxu1 }
 0x2a9   : > { %v1673_v48 = vadd.f32 %v633_v41, %v1347_v0  ;;  %v637_v11 = vadd.f32 %v636_v45, %v1665_v19 }
 0x2aa   : > { %v1677_v51 = vmax.f32 %v1669_v43, 0.0  ;;  %v1680_v52 = vadd.f32 %v635_v44, %v1359_v5 }
 0x2ab   : > { %v1683_v53 = vadd.f32 %v637_v11, %v1351_v2  ;;  %v1691_v0 = vmax.f32 %v1673_v48, 0.0 }
 0x2ac   : > { %v1686_v1 = vmax.f32 %v1680_v52, 0.0  ;;  %655 = vrot.lane.b32.xlu0 %v1677_v51, %s1187_s16 }
 0x2ad   : > { %v1694_v54 = vmax.f32 %v1683_v53, 0.0 }
 0x2ae   : > { %657 = vrot.lane.b32.xlu1 %v1686_v1, %s1187_s16  ;;  %v727_v5 = vpack.c.bf16 %v1686_v1, %v1677_v51 }
 0x2af   : > { %v728_v2 = vpack.c.bf16 %v1694_v54, %v1691_v0 }
 0x2b0   : > { %673 = vrot.lane.b32.xlu0 %v1677_v51, %s1188_s8 }
 0x2b2   : > { %675 = vrot.lane.b32.xlu1 %v1686_v1, %s1188_s8 }
 0x2b4   : > { %691 = vrot.lane.b32.xlu0 %v1677_v51, %s1189_s18 }
 0x2b6   : > { %693 = vrot.lane.b32.xlu1 %v1686_v1, %s1189_s18 }
 0x2b8   : > { %709 = vrot.lane.b32.xlu0 %v1677_v51, %s1190_s19 }
 0x2ba   : > { %711 = vrot.lane.b32.xlu1 %v1686_v1, %s1190_s19 }
 0x2bc   : > { %729 = vrot.lane.b32.xlu0 %v1677_v51, %s1191_s20 }
 0x2be   : > { %731 = vrot.lane.b32.xlu1 %v1686_v1, %s1191_s20 }
 0x2c0   : > { %747 = vrot.lane.b32.xlu0 %v1677_v51, %s1192_s11 }
 0x2c2   : > { %749 = vrot.lane.b32.xlu1 %v1686_v1, %s1192_s11 }
 0x2c4   : > { %765 = vrot.lane.b32.xlu0 %v1677_v51, %s1193_s14 }
 0x2c6   : > { %767 = vrot.lane.b32.xlu1 %v1686_v1, %s1193_s14 }
 0x2c8   : > { %659 = vrot.lane.b32.xlu0 %v1691_v0, %s1187_s16 }
 0x2ca   : > { %661 = vrot.lane.b32.xlu1 %v1694_v54, %s1187_s16  ;;  %s1970_s16 = sshll.u32 %s1337_s29, 5 }
 0x2cc   : > { %677 = vrot.lane.b32.xlu0 %v1691_v0, %s1188_s8 }
 0x2ce   : > { %679 = vrot.lane.b32.xlu1 %v1694_v54, %s1188_s8 }
 0x2d0   : > { %695 = vrot.lane.b32.xlu0 %v1691_v0, %s1189_s18 }
 0x2d2   : > { %697 = vrot.lane.b32.xlu1 %v1694_v54, %s1189_s18  ;;  %s269_s18 = scalar_lea.vmem [#allocation6], %s1970_s16 }
 0x2d4   : > { %713 = vrot.lane.b32.xlu0 %v1691_v0, %s1190_s19 }
 0x2d6   : > { %715 = vrot.lane.b32.xlu1 %v1694_v54, %s1190_s19  ;;  %s929_s19 = sshll.u32 %s269_s18, 4  ;;  %s1906_s19 = int_to_ptr.vmem [resolvable:$true] %s929_s19 }
 0x2d7   : > { %s1116_s12 = scalar_lea.vmem %s1906_s19, 512  ;;  %p1123_p8 = scmp.lt.s32.totalorder %s1906_s19, %s1121_s15 }
 0x2d8   : > { %783 = vrot.lane.b32.xlu0 %v1677_v51, %s1194_s26  ;;  %p1117_p6 = scmp.ne.s32.totalorder %s1906_s19, %s1116_s12  ;;  %p1124_p10 = scmp.lt.s32.totalorder %s1122_s17, %s1116_s12 }
 0x2da   : > { %785 = vrot.lane.b32.xlu1 %v1686_v1, %s1194_s26  ;;  %p1118_p12 = pnand %p1117_p6, %p1971_p11  ;;  %p1125_p0 = por %p1124_p10, %p1123_p8 }
 0x2dc   : > { %733 = vrot.lane.b32.xlu0 %v1691_v0, %s1191_s20  ;;  %p1119_p13 = pneg %p1118_p12 }
 0x2de   : > { %735 = vrot.lane.b32.xlu1 %v1694_v54, %s1191_s20  ;;  %s1025_s20 = sshll.u32 %s1254_s25, 9  ;;  %s916_s25 = scalar_lea.sflag [#allocation5], %s1337_s29 }
 0x2df   : > { %p1126_p2 = pnand %p1125_p0, %p1119_p13 }
 0x2e0   : > { %751 = vrot.lane.b32.xlu0 %v1691_v0, %s1192_s11 }
 0x2e2   : > { %753 = vrot.lane.b32.xlu1 %v1694_v54, %s1192_s11 }
 0x2e4   : > { %769 = vrot.lane.b32.xlu0 %v1691_v0, %s1193_s14 }
 0x2e6   : > { %771 = vrot.lane.b32.xlu1 %v1694_v54, %s1193_s14 }
 0x2e8   : > { %787 = vrot.lane.b32.xlu0 %v1691_v0, %s1194_s26 }
 0x2ea   : > { %789 = vrot.lane.b32.xlu1 %v1694_v54, %s1194_s26  ;;  %s1911_s26 = scalar_lea.hbm %s1962_s6, %s1025_s20 }
 0x31e   : > { %v656_v55 = vpop.permute.xlu0 %655 }
 0x320   : > { %v658_v58 = vpop.permute.xlu1 %657 }
 0x322   : > { %v674_v3 = vpop.permute.xlu0 %673 }
 0x324   : > { %v676_v6 = vpop.permute.xlu1 %675 }
 0x326   : > { %v692_v8 = vpop.permute.xlu0 %691 }
 0x328   : > { %v694_v59 = vpop.permute.xlu1 %693 }
 0x32a   : > { %v710_v60 = vpop.permute.xlu0 %709 }
 0x32c   : > { %v712_v61 = vpop.permute.xlu1 %711 }
 0x32e   : > { %v1762_v10 = vpop.permute.xlu0 %729 }
 0x330   : > { %v1764_v14 = vpop.permute.xlu1 %731 }
 0x332   : > { %v1766_v4 = vpop.permute.xlu0 %747 }
 0x334   : > { %v1768_v9 = vpop.permute.xlu1 %749 }
 0x336   : > { %v1770_v17 = vpop.permute.xlu0 %765 }
 0x338   : > { %v1772_v20 = vpop.permute.xlu1 %767 }
 0x33a   : > { %v660_v21 = vpop.permute.xlu0 %659 }
 0x33b   : > { %v663_v24 = vsel %vm311_vm1, %v656_v55, %v660_v21  ;;  %v665_v12 = vsel %vm311_vm1, %v660_v21, %v656_v55 }
 0x33c   : > { %v662_v15 = vpop.permute.xlu1 %661  ;;  %v667_v29 = vmul.f32 %v665_v12, %v1465_v22  ;;  %v668_v30 = vmul.f32 %v663_v24, %v1468_v23 }
 0x33d   : > { %v664_v25 = vsel %vm311_vm1, %v658_v58, %v662_v15  ;;  %v666_v26 = vsel %vm311_vm1, %v662_v15, %v658_v58 }
 0x33e   : > { %v669_v33 = vmul.f32 %v666_v26, %v1465_v22  ;;  %v670_v34 = vmul.f32 %v664_v25, %v1468_v23  ;;  %v678_v37 = vpop.permute.xlu0 %677 }
 0x33f   : > { %v681_v38 = vsel %vm338_vm2, %v674_v3, %v678_v37  ;;  %v683_v18 = vsel %vm338_vm2, %v678_v37, %v674_v3 }
 0x340   : > { %v671_v41 = vpack.c.bf16 %v669_v33, %v667_v29  ;;  %v680_v42 = vpop.permute.xlu1 %679  ;;  %v672_v44 = vpack.c.bf16 %v670_v34, %v668_v30  ;;  %v685_v22 = vmul.f32 %v683_v18, %v1485_v39  ;;  %v686_v23 = vmul.f32 %v681_v38, %v1488_v40 }
 0x341   : > { %v682_v45 = vsel %vm338_vm2, %v676_v6, %v680_v42  ;;  %v684_v11 = vsel %vm338_vm2, %v680_v42, %v676_v6 }
 0x342   : > { %v687_v55 = vmul.f32 %v684_v11, %v1485_v39  ;;  %v688_v58 = vmul.f32 %v682_v45, %v1488_v40  ;;  %801 = vmatprep.subr.bf16.mxu1 %v672_v44  ;;  %v696_v21 = vpop.permute.xlu0 %695 }
 0x343   : > { %v699_v3 = vsel %vm365_vm3, %v692_v8, %v696_v21  ;;  %v701_v24 = vsel %vm365_vm3, %v696_v21, %v692_v8  ;;  %802 = vmatpush1.bf16.msra.mxu1 %v671_v41 }
 0x344   : > { %v689_v12 = vpack.c.bf16 %v687_v55, %v685_v22  ;;  %v698_v15 = vpop.permute.xlu1 %697  ;;  %v690_v6 = vpack.c.bf16 %v688_v58, %v686_v23  ;;  %v703_v40 = vmul.f32 %v701_v24, %v1505_v56  ;;  %v704_v26 = vmul.f32 %v699_v3, %v1508_v57 }
 0x345   : > { %v700_v25 = vsel %vm365_vm3, %v694_v59, %v698_v15  ;;  %v702_v39 = vsel %vm365_vm3, %v698_v15, %v694_v59 }
 0x346   : > { %v705_v29 = vmul.f32 %v702_v39, %v1505_v56  ;;  %v706_v30 = vmul.f32 %v700_v25, %v1508_v57  ;;  %803 = vmatprep.subr.bf16.mxu1 %v690_v6  ;;  %v714_v8 = vpop.permute.xlu0 %713 }
 0x347   : > { %v717_v33 = vsel %vm392_vm4, %v710_v60, %v714_v8  ;;  %v719_v34 = vsel %vm392_vm4, %v714_v8, %v710_v60  ;;  %804 = vmatpush1.bf16.msra.mxu1 %v689_v12 }
 0x348   : > { %v707_v37 = vpack.c.bf16 %v705_v29, %v703_v40  ;;  %v716_v38 = vpop.permute.xlu1 %715  ;;  %v708_v59 = vpack.c.bf16 %v706_v30, %v704_v26  ;;  %v721_v57 = vmul.f32 %v719_v34, %v1525_v27  ;;  %v722_v41 = vmul.f32 %v717_v33, %v1528_v28 }
 0x349   : > { %v718_v18 = vsel %vm392_vm4, %v712_v61, %v716_v38  ;;  %v720_v56 = vsel %vm392_vm4, %v716_v38, %v712_v61 }
 0x34a   : > { %v723_v42 = vmul.f32 %v720_v56, %v1525_v27  ;;  %v724_v44 = vmul.f32 %v718_v18, %v1528_v28  ;;  %805 = vmatprep.subr.bf16.mxu1 %v708_v59  ;;  %v784_v60 = vpop.permute.xlu0 %783 }
 0x34b   : > { %806 = vmatpush1.bf16.msra.mxu1 %v707_v37 }
 0x34c   : > { %v725_v45 = vpack.c.bf16 %v723_v42, %v721_v57  ;;  %v786_v11 = vpop.permute.xlu1 %785  ;;  %v726_v22 = vpack.c.bf16 %v724_v44, %v722_v41 }
 0x34e   : > { %807 = vmatprep.subr.bf16.mxu1 %v726_v22  ;;  %v734_v23 = vpop.permute.xlu0 %733 }
 0x34f   : > { %v737_v61 = vsel %vm421_vm5, %v1762_v10, %v734_v23  ;;  %v739_v55 = vsel %vm421_vm5, %v734_v23, %v1762_v10  ;;  %808 = vmatpush1.bf16.msra.mxu1 %v725_v45 }
 0x350   : > { %v736_v27 = vpop.permute.xlu1 %735  ;;  %809 = vmatprep.subr.bf16.mxu1 %v728_v2  ;;  %v741_v21 = vmul.f32 %v737_v61, %v1545_v46  ;;  %v742_v3 = vmul.f32 %v739_v55, %v1548_v47 }
 0x351   : > { %v738_v28 = vsel %vm421_vm5, %v1764_v14, %v736_v27  ;;  %v740_v58 = vsel %vm421_vm5, %v736_v27, %v1764_v14 }
 0x352   : > { %v743_v10 = vmul.f32 %v738_v28, %v1545_v46  ;;  %v744_v24 = vmul.f32 %v740_v58, %v1548_v47  ;;  %v752_v12 = vpop.permute.xlu0 %751 }
 0x353   : > { %v755_v0 = vsel %vm448_vm6, %v1766_v4, %v752_v12  ;;  %v757_v54 = vsel %vm448_vm6, %v752_v12, %v1766_v4  ;;  %810 = vmatpush1.bf16.msra.mxu1 %v727_v5 }
 0x354   : > { %v745_v2 = vpack.c.bf16 %v743_v10, %v741_v21  ;;  %v754_v14 = vpop.permute.xlu1 %753  ;;  %v746_v15 = vpack.c.bf16 %v744_v24, %v742_v3  ;;  %v759_v6 = vmul.f32 %v755_v0, %v1571_v62  ;;  %v760_v25 = vmul.f32 %v757_v54, %v1574_v63 }
 0x355   : > { %v756_v46 = vsel %vm448_vm6, %v1768_v9, %v754_v14  ;;  %v758_v47 = vsel %vm448_vm6, %v754_v14, %v1768_v9 }
 0x356   : > { %v761_v4 = vmul.f32 %v756_v46, %v1571_v62  ;;  %v762_v51 = vmul.f32 %v758_v47, %v1574_v63  ;;  %v770_v1 = vpop.permute.xlu0 %769  ;;  %811 = vmatprep.subr.bf16.mxu1 %v746_v15 }
 0x357   : > { %v773_v5 = vsel %vm475_vm7, %v1770_v17, %v770_v1  ;;  %v775_v39 = vsel %vm475_vm7, %v770_v1, %v1770_v17  ;;  %812 = vmatpush1.bf16.msra.mxu1 %v745_v2 }
 0x358   : > { %v763_v9 = vpack.c.bf16 %v761_v4, %v759_v6  ;;  %v772_v40 = vpop.permute.xlu1 %771  ;;  %v764_v26 = vpack.c.bf16 %v762_v51, %v760_v25  ;;  %v777_v29 = vmul.f32 %v773_v5, %v1591_v31  ;;  %v778_v30 = vmul.f32 %v775_v39, %v1594_v32 }
 0x359   : > { %v774_v62 = vsel %vm475_vm7, %v1772_v20, %v772_v40  ;;  %v776_v63 = vsel %vm475_vm7, %v772_v40, %v1772_v20 }
 0x35a   : > { %v779_v8 = vmul.f32 %v774_v62, %v1591_v31  ;;  %v780_v17 = vmul.f32 %v776_v63, %v1594_v32  ;;  %v788_v33 = vpop.permute.xlu0 %787  ;;  %813 = vmatprep.subr.bf16.mxu1 %v764_v26 }
 0x35b   : > { %v791_v34 = vsel %vm502_vm8, %v784_v60, %v788_v33  ;;  %v793_v37 = vsel %vm502_vm8, %v788_v33, %v784_v60  ;;  %814 = vmatpush1.bf16.msra.mxu1 %v763_v9 }
 0x35c   : > { %v781_v38 = vpack.c.bf16 %v779_v8, %v777_v29  ;;  %v790_v59 = vpop.permute.xlu1 %789  ;;  %v782_v20 = vpack.c.bf16 %v780_v17, %v778_v30  ;;  %v795_v32 = vmul.f32 %v1612_v49, %v791_v34  ;;  %v796_v56 = vmul.f32 %v1617_v50, %v793_v37 }
 0x35d   : > { %v792_v18 = vsel %vm502_vm8, %v786_v11, %v790_v59  ;;  %v794_v31 = vsel %vm502_vm8, %v790_v59, %v786_v11 }
 0x35e   : > { %v797_v57 = vmul.f32 %v1612_v49, %v792_v18  ;;  %v798_v41 = vmul.f32 %v1617_v50, %v794_v31  ;;  %815 = vmatprep.subr.bf16.mxu1 %v782_v20 }
 0x35f   : > { %816 = vmatpush1.bf16.msra.mxu1 %v781_v38 }
 0x360   : > { %v799_v42 = vpack.c.bf16 %v797_v57, %v795_v32  ;;  %v800_v44 = vpack.c.bf16 %v798_v41, %v796_v56 }
 0x362   : > { %817 = vmatprep.subr.bf16.mxu1 %v800_v44 }
 0x363   : > { %818 = vmatpush1.bf16.msra.mxu1 %v799_v42 }
 0x366   : > { %834 = vmatmul.mubr.bf16.vlgmr.msra.gmra.mrb[4].mxu1 %v1634_v13 }
 0x439   : > { %v835_v60 = vpop.f32.mrb[4].mxu1 }
 0x43a   : > { %v836_v16 = vadd.f32 %v835_v60, %v1644_v7  ;;  %v837_v45 = vpop.f32.mrb[5].mxu1 }
 0x43b   : > { %v838_v11 = vadd.f32 %v837_v45, %v1644_v7  ;;  %v839_v22 = vpop.f32.mrb[6].mxu1 }
 0x43c   : > { %v842_v23 = vmax.f32 %v836_v16, 0.0  ;;  %v840_v61 = vpop.f32.mrb[7].mxu1 }
 0x43d   : > { %v843_v49 = vmax.f32 %v838_v11, 0.0 }
 0x43e   : > { %v844_v50 = vpack.c.bf16 %v842_v23, %v842_v23 }
 0x43f   : > { %v845_v55 = vpack.c.bf16 %v843_v49, %v843_v49 }
 0x440   : > { %v847_v27 = vsel %vm589_vm9, %v844_v50, 0 }
 0x441   : > { %1017 = vmatprep.subr.msk.bf16.mxu0 %vm589_vm9, %v845_v55 }
 0x442   : > { %853 = vmatpush1.bf16.msra.mxu0 %v847_v27 }
 0x445   : > { %1018 = vmatmul.mubr.msk.bf16.vlgmr.msra.gmra.mrb[4].mxu0 %vm585_vm10, %v1656_v35 }
 0x518   : > { %v886_v13 = vpop.f32.mrb[4].mxu0 }
 0x519   : > { %v887_v28 = vadd.f32 %v886_v13, %v1662_v36  ;;  %v888_v7 = vpop.f32.mrb[5].mxu0 }
 0x51a   : > { %v889_v58 = vadd.f32 %v888_v7, %v1662_v36  ;;  %v890_v21 = vpop.f32.mrb[6].mxu0 }
 0x51b   : > { %v895_v3 = vadd.f32 %v887_v28, %v1669_v43  ;;  %v891_v10 = vadd.f32 %v890_v21, %v1665_v19  ;;  %v892_v24 = vpop.f32.mrb[7].mxu0 }
 0x51c   : > { %v896_v12 = vadd.f32 %v889_v58, %v1673_v48  ;;  %v893_v35 = vadd.f32 %v892_v24, %v1665_v19 }
 0x51d   : > { %v907_v0 = vmax.f32 %v895_v3, 0.0  ;;  %v897_v54 = vadd.f32 %v891_v10, %v1680_v52 }
 0x51e   : > { %v908_v36 = vmax.f32 %v896_v12, 0.0  ;;  %v898_v2 = vadd.f32 %v893_v35, %v1683_v53 }
 0x51f   : > { %911 = vst [vmem:[%s269_s18] sm:$0xff] %v907_v0  ;;  %v909_v43 = vmax.f32 %v897_v54, 0.0 }
 0x520   : > { %912 = vst [vmem:[%s269_s18 + $0x8] sm:$0xff] %v908_v36  ;;  %v910_v14 = vmax.f32 %v898_v2, 0.0 }
 0x521   : > { %913 = vst [vmem:[%s269_s18 + $0x10] sm:$0xff] %v909_v43 }
 0x522   : > { %914 = vst [vmem:[%s269_s18 + $0x18] sm:$0xff] %v910_v14 }
 0x523   : > { %1129 = shalt.err (!%p1126_p2)
}
 0x524   : > { %s1130_s7 = scalar_lea.hbm %s1911_s26, 512  ;;  %s1134_s18 = scalar_lea.hbm %s1962_s6, 1024 }
 0x525   : > { %p1131_p4 = scmp.ne.s32.totalorder %s1911_s26, %s1130_s7  ;;  %p1135_p9 = scmp.lt.u32.totalorder %s1911_s26, %s1962_s6 }
 0x526   : > { %p1136_p1 = scmp.lt.u32.totalorder %s1134_s18, %s1130_s7  ;;  %p1138_p6 = scmp.lt.u32.totalorder %s1130_s7, %s1911_s26 }
 0x527   : > { %p1132_p5 = pnand %p1131_p4, %p1971_p11 }
 0x528   : > { %p1137_p3 = por %p1136_p1, %p1135_p9 }
 0x529   : > { %p1133_p7 = pneg %p1132_p5 }
 0x52a   : > { %p1139_p12 = por %p1138_p6, %p1137_p3 }
 0x52c   : > { %p1140_p13 = pnand %p1139_p12, %p1133_p7 }
 0x52e   : > { %1143 = shalt.err (!%p1140_p13)
}
 0x52f   : > { %s1197_s14 = smov 256  }
 0x530   : > { %1028 = dma.vmem_to_hbm [thread:$0]  (%p1971_p11), %s1906_s19, 512, %s1911_s26, %s916_s25, %s1197_s14, %s1197_s14, %s1188_s8  }
 0x531 PF: > { %s944_s12 = sand.u32 1, %s1170_s21   ;;  %p1972_p8 = scmp.ne.s32.totalorder %s1968_s10, 0 }
 0x532   : > { %p1973_p10 = scmp.ge.s32.totalorder %s1182_s24, 2  ;;  %s945_s13 = scalar_lea.sflag [#allocation5], %s944_s12 }
 0x534   : > { %p1035_p0 = pnand %p1973_p10, %p1972_p8 }
 0x536   : > { %1165 = dma.done.wait (!%p1035_p0), %s945_s13, 512  }
 0x537   : > { %1167 = vsyncadd (!%p1035_p0), %s945_s13, 4294966784  ;;  %p19_p2 = scmp.ge.s32.totalorder %s1258_s27, 4   ;;  %s1974_s21 = smov %s1174_s22 }
 0x538   : > { %s1975_s22 = smov %s1178_s23  ;;  %s1976_s23 = smov %s1270_s30 }
 0x539   : > { %s1977_s24 = smov %s1258_s27  ;;  %21 = sbr.rel (!%p19_p2) target bundleno = 5 (0x5), region = 89 }
 0x540   :  { %950 = vsyncpa [#allocation4], 1 }
 0x541   :  { %952 = vsyncpa [#allocation4 + $0x1], 1 }
 0x542   :  { %953 = vsyncpa [#allocation5], 1 }
 0x543   :  { %955 = vsyncpa [#allocation5 + $0x1], 1 }

</bundles_post_ra>
